<compile_context>
chip_gen: v5e
topology: v5e:2x2
jax: 0.10.0
libtpu: 0.0.40
codegen_flags: <defaults>
</compile_context>

<pallas_src>
import functools

import numpy as np

import jax
import jax.numpy as jnp
from jax.experimental import pallas as pl
from jax.experimental.pallas import tpu as pltpu

EPS = 1e-5


# ---------------------------------------------------------------------------
# kernel
# ---------------------------------------------------------------------------
def bottleneck_kernel(x_ref, w1_ref, w2_ref, w3_ref,
                      b1_ref, b2_ref, b3_ref, m_ref, o_ref, *, W):
    """One image per grid step.  Every tensor is (channels, H*W)."""
    HW = x_ref.shape[2]
    P = w1_ref.shape[0]

    # ---- conv1 (1x1, bn1 scale folded into w1) + bias + relu --------------
    t1 = jnp.dot(w1_ref[...], x_ref[0].astype(jnp.bfloat16),
                 preferred_element_type=jnp.float32)              # (P, HW)
    t1 = jnp.maximum(t1 + b1_ref[...], 0.0)

    # ---- conv2 (3x3, stride 1, pad 1) as ONE K = 9*P matmul ---------------
    # Patch matrix (9P, HW): tap (ky,kx) is t1 shifted along the flattened
    # spatial lane axis by (ky-1)*W + (kx-1), with out-of-image positions
    # zeroed by a precomputed 0/1 mask row.  Shifts use unambiguous static
    # slice+concat; sublane concat of 8-row f32 pieces stays (8,128)-aligned.
    taps = []
    for ky in range(3):
        for kx in range(3):
            t = ky * 3 + kx
            k = (ky - 1) * W + (kx - 1)                           # lane shift
            if k > 0:
                sh = jnp.concatenate(
                    [t1[:, k:], jnp.zeros((P, k), jnp.float32)], axis=1)
            elif k < 0:
                sh = jnp.concatenate(
                    [jnp.zeros((P, -k), jnp.float32), t1[:, :HW + k]], axis=1)
            else:
                sh = t1
            if not (ky == 1 and kx == 1):          # center tap is always valid
                sh = sh * m_ref[t:t + 1, :]
            taps.append(sh)
    patch = jnp.concatenate(taps, axis=0).astype(jnp.bfloat16)    # (9P, HW)

    t2 = jnp.dot(w2_ref[...], patch, preferred_element_type=jnp.float32)
    t2 = jnp.maximum(t2 + b2_ref[...], 0.0)                       # (P, HW)

    # ---- conv3 (1x1) + bias + residual + relu -----------------------------
    t3 = jnp.dot(w3_ref[...], t2.astype(jnp.bfloat16),
                 preferred_element_type=jnp.float32)              # (Cin, HW)
    # residual: re-read x (f32, exact) right here instead of holding it live
    o_ref[0] = jnp.maximum(t3 + b3_ref[...] + x_ref[0], 0.0)


# ---------------------------------------------------------------------------
# wrapper
# ---------------------------------------------------------------------------
def bottleneck_pallas(x_flat, w1, w2, w3, b1, b2, b3, masks, *, H, W):
    N, Cin, HW = x_flat.shape
    P = w1.shape[0]
    assert HW == H * W
    # TODO(synk): downsample / stride>1 projection-shortcut branch of the
    # PyTorch Bottleneck is not implemented; this kernel covers the default
    # stride=1, downsample=None configuration (requires inplanes == 4*planes).
    assert Cin == 4 * P

    full = lambda shape: pl.BlockSpec(shape, lambda n: (0,) * len(shape))

    return pl.pallas_call(
        functools.partial(bottleneck_kernel, W=W),
        out_shape=jax.ShapeDtypeStruct((N, Cin, HW), jnp.float32),
        grid_spec=pltpu.PrefetchScalarGridSpec(
            num_scalar_prefetch=0,
            grid=(N,),                     # >=2 steps so both v7x TCs get work
            in_specs=[
                pl.BlockSpec((1, Cin, HW), lambda n: (n, 0, 0)),  # x (f32)
                full((P, Cin)),            # w1  bf16, bn1 scale folded
                full((P, 9 * P)),          # w2  bf16, bn2 scale folded
                full((Cin, P)),            # w3  bf16, bn3 scale folded
                full((P, 1)),              # bn1 bias (f32)
                full((P, 1)),              # bn2 bias (f32)
                full((Cin, 1)),            # bn3 bias (f32)
                full((9, HW)),             # 3x3 edge masks (f32 0/1)
            ],
            out_specs=pl.BlockSpec((1, Cin, HW), lambda n: (n, 0, 0)),
        ),
        compiler_params=pltpu.CompilerParams(
            dimension_semantics=("parallel",)),
    )(x_flat, w1, w2, w3, b1, b2, b3, masks)


# ---------------------------------------------------------------------------
# parameter preparation (constant folding outside the kernel)
# ---------------------------------------------------------------------------
def fold_bn(gamma, beta, mean, var):
    scale = gamma / jnp.sqrt(var + EPS)
    bias = beta - mean * scale
    return scale, bias


def build_tap_masks(H, W):
    """(9, H*W) float32 0/1 validity masks for the 3x3 taps (pad=1)."""
    hh, ww = np.meshgrid(np.arange(H), np.arange(W), indexing="ij")
    hh, ww = hh.reshape(-1), ww.reshape(-1)
    rows = []
    for ky in range(3):
        for kx in range(3):
            dy, dx = ky - 1, kx - 1
            rows.append(((hh + dy >= 0) & (hh + dy < H) &
                         (ww + dx >= 0) & (ww + dx < W)).astype(np.float32))
    return jnp.asarray(np.stack(rows, axis=0))


def prepare_params(w1_oihw, w2_oihw, w3_oihw, bn1, bn2, bn3):
    P = w1_oihw.shape[0]
    s1, b1 = fold_bn(*bn1)
    s2, b2 = fold_bn(*bn2)
    s3, b3 = fold_bn(*bn3)
    # 1x1 convs -> (Cout, Cin) matmul weights; BN scale folded per out-channel
    w1 = (w1_oihw[:, :, 0, 0] * s1[:, None]).astype(jnp.bfloat16)       # (P, Cin)
    # 3x3 conv OIHW -> (O, KH, KW, I) -> (O, 9*I); columns ordered (tap, in-ch)
    w2 = (jnp.transpose(w2_oihw, (0, 2, 3, 1)).reshape(P, 9 * P)
          * s2[:, None]).astype(jnp.bfloat16)                           # (P, 9P)
    w3 = (w3_oihw[:, :, 0, 0] * s3[:, None]).astype(jnp.bfloat16)       # (4P, P)
    return w1, w2, w3, b1[:, None], b2[:, None], b3[:, None]


# ---------------------------------------------------------------------------
# pure-JAX/XLA reference (torch eval-mode semantics)
# ---------------------------------------------------------------------------
def reference_forward(x_nchw, w1_oihw, w2_oihw, w3_oihw, bn1, bn2, bn3):
    dn = ('NCHW', 'OIHW', 'NCHW')

    def bn(y, p):
        g, b, m, v = p
        g, b, m, v = (t[None, :, None, None] for t in (g, b, m, v))
        return (y - m) / jnp.sqrt(v + EPS) * g + b

    out = jax.lax.conv_general_dilated(x_nchw, w1_oihw, (1, 1), 'VALID',
                                       dimension_numbers=dn)
    out = jax.nn.relu(bn(out, bn1))
    out = jax.lax.conv_general_dilated(out, w2_oihw, (1, 1),
                                       ((1, 1), (1, 1)), dimension_numbers=dn)
    out = jax.nn.relu(bn(out, bn2))
    out = jax.lax.conv_general_dilated(out, w3_oihw, (1, 1), 'VALID',
                                       dimension_numbers=dn)
    out = bn(out, bn3)
    return jax.nn.relu(out + x_nchw)


if __name__ == "__main__":
    # Bottleneck(inplanes=32, planes=8), stride=1, downsample=None
    planes = 8
    inplanes = planes * 4
    N, H, W = 2, 16, 16

    key = jax.random.PRNGKey(0)
    ks = jax.random.split(key, 16)

    x_nchw = jax.random.normal(ks[0], (N, inplanes, H, W), jnp.float32)

    w1_oihw = 0.1 * jax.random.normal(ks[1], (planes, inplanes, 1, 1), jnp.float32)
    w2_oihw = 0.1 * jax.random.normal(ks[2], (planes, planes, 3, 3), jnp.float32)
    w3_oihw = 0.1 * jax.random.normal(ks[3], (planes * 4, planes, 1, 1), jnp.float32)

    def bn_params(kg, kb, km, kv, c):
        gamma = 1.0 + 0.1 * jax.random.normal(kg, (c,), jnp.float32)
        beta = 0.1 * jax.random.normal(kb, (c,), jnp.float32)
        mean = 0.1 * jax.random.normal(km, (c,), jnp.float32)
        var = 0.5 + jnp.abs(jax.random.normal(kv, (c,), jnp.float32))
        return gamma, beta, mean, var

    bn1 = bn_params(ks[4], ks[5], ks[6], ks[7], planes)
    bn2 = bn_params(ks[8], ks[9], ks[10], ks[11], planes)
    bn3 = bn_params(ks[12], ks[13], ks[14], ks[15], planes * 4)

    w1_k, w2_k, w3_k, b1_k, b2_k, b3_k = prepare_params(
        w1_oihw, w2_oihw, w3_oihw, bn1, bn2, bn3)
    masks = build_tap_masks(H, W)

    # NCHW -> (N, C, H*W): free contiguous reshape (no transpose needed)
    x_flat = x_nchw.reshape(N, inplanes, H * W)

    out_flat = bottleneck_pallas(x_flat, w1_k, w2_k, w3_k,
                                 b1_k, b2_k, b3_k, masks, H=H, W=W)
    out_nchw = out_flat.reshape(N, inplanes, H, W)
    jax.block_until_ready(out_nchw)

    # sanity check vs. an independent f32 XLA reference (kernel matmuls run
    # in bf16, hence bf16-appropriate tolerance)
    ref = reference_forward(x_nchw, w1_oihw, w2_oihw, w3_oihw, bn1, bn2, bn3)
    max_err = float(jnp.max(jnp.abs(out_nchw - ref)))
    assert jnp.allclose(out_nchw, ref, atol=1e-1, rtol=5e-2), max_err

    print("KERNEL_OK")
</pallas_src>

<mosaic_0001>
module attributes {stable_mosaic.version = 11 : i64} {
  func.func @bottleneck_kernel(%arg0: i32, %arg1: memref<1x32x256xf32, #tpu.memory_space<vmem>>, %arg2: memref<8x32xbf16, #tpu.memory_space<vmem>>, %arg3: memref<8x72xbf16, #tpu.memory_space<vmem>>, %arg4: memref<32x8xbf16, #tpu.memory_space<vmem>>, %arg5: memref<8x1xf32, #tpu.memory_space<vmem>>, %arg6: memref<8x1xf32, #tpu.memory_space<vmem>>, %arg7: memref<32x1xf32, #tpu.memory_space<vmem>>, %arg8: memref<9x256xf32, #tpu.memory_space<vmem>>, %arg9: memref<1x32x256xf32, #tpu.memory_space<vmem>>) attributes {dimension_semantics = [#tpu.dimension_semantics<parallel>], iteration_bounds = array<i64: 2>, scalar_prefetch = 0 : i64, scratch_operands = 0 : i64, tpu.core_type = #tpu.core_type<tc>, window_params = [{transform_indices = @transform_0, window_bounds = array<i64: 1, 32, 256>}, {pipeline_mode = #tpu.pipeline_mode<synchronous>, transform_indices = @transform_1, window_bounds = array<i64: 8, 32>}, {pipeline_mode = #tpu.pipeline_mode<synchronous>, transform_indices = @transform_2, window_bounds = array<i64: 8, 72>}, {pipeline_mode = #tpu.pipeline_mode<synchronous>, transform_indices = @transform_3, window_bounds = array<i64: 32, 8>}, {pipeline_mode = #tpu.pipeline_mode<synchronous>, transform_indices = @transform_4, window_bounds = array<i64: 8, 1>}, {pipeline_mode = #tpu.pipeline_mode<synchronous>, transform_indices = @transform_5, window_bounds = array<i64: 8, 1>}, {pipeline_mode = #tpu.pipeline_mode<synchronous>, transform_indices = @transform_6, window_bounds = array<i64: 32, 1>}, {pipeline_mode = #tpu.pipeline_mode<synchronous>, transform_indices = @transform_7, window_bounds = array<i64: 9, 256>}, {transform_indices = @transform_8, window_bounds = array<i64: 1, 32, 256>}]} {
    %c0 = arith.constant 0 : index
    %c0_0 = arith.constant 0 : index
    %0 = vector.load %arg2[%c0, %c0_0] : memref<8x32xbf16, #tpu.memory_space<vmem>>, vector<8x32xbf16>
    %c0_1 = arith.constant 0 : index
    %c0_2 = arith.constant 0 : index
    %c0_3 = arith.constant 0 : index
    %1 = vector.load %arg1[%c0_1, %c0_2, %c0_3] : memref<1x32x256xf32, #tpu.memory_space<vmem>>, vector<1x32x256xf32>
    %2 = vector.shape_cast %1 : vector<1x32x256xf32> to vector<32x256xf32>
    %3 = arith.truncf %2 : vector<32x256xf32> to vector<32x256xbf16>
    %cst = arith.constant dense<0.000000e+00> : vector<8x256xf32>
    %4 = tpu.matmul %0, %3, %cst {dimension_numbers = #tpu.dot_dimension_numbers<[1], [0], [0], [1], [0, 0, 1, 1], [], []>} : vector<8x32xbf16>, vector<32x256xbf16>, vector<8x256xf32> -> vector<8x256xf32>
    %c0_4 = arith.constant 0 : index
    %c0_5 = arith.constant 0 : index
    %5 = vector.load %arg5[%c0_4, %c0_5] : memref<8x1xf32, #tpu.memory_space<vmem>>, vector<8x1xf32>
    %6 = vector.broadcast %5 : vector<8x1xf32> to vector<8x256xf32>
    %7 = arith.addf %4, %6 : vector<8x256xf32>
    %cst_6 = arith.constant 0.000000e+00 : f32
    %8 = vector.broadcast %cst_6 : f32 to vector<8x256xf32>
    %9 = arith.maximumf %7, %8 : vector<8x256xf32>
    %cst_7 = arith.constant 0.000000e+00 : f32
    %10 = vector.broadcast %cst_7 : f32 to vector<8x17xf32>
    %11 = vector.extract_strided_slice %9 {offsets = [0, 0], sizes = [8, 239], strides = [1, 1]} : vector<8x256xf32> to vector<8x239xf32>
    %12 = tpu.concatenate %10, %11 in 1 : vector<8x17xf32>, vector<8x239xf32> -> vector<8x256xf32>
    %c0_8 = arith.constant 0 : index
    %c0_9 = arith.constant 0 : index
    %13 = vector.load %arg8[%c0_8, %c0_9] : memref<9x256xf32, #tpu.memory_space<vmem>>, vector<1x256xf32>
    %14 = vector.broadcast %13 : vector<1x256xf32> to vector<8x256xf32>
    %15 = arith.mulf %12, %14 : vector<8x256xf32>
    %cst_10 = arith.constant 0.000000e+00 : f32
    %16 = vector.broadcast %cst_10 : f32 to vector<8x16xf32>
    %17 = vector.extract_strided_slice %9 {offsets = [0, 0], sizes = [8, 240], strides = [1, 1]} : vector<8x256xf32> to vector<8x240xf32>
    %18 = tpu.concatenate %16, %17 in 1 : vector<8x16xf32>, vector<8x240xf32> -> vector<8x256xf32>
    %c1 = arith.constant 1 : index
    %c0_11 = arith.constant 0 : index
    %19 = vector.load %arg8[%c1, %c0_11] : memref<9x256xf32, #tpu.memory_space<vmem>>, vector<1x256xf32>
    %20 = vector.broadcast %19 : vector<1x256xf32> to vector<8x256xf32>
    %21 = arith.mulf %18, %20 : vector<8x256xf32>
    %cst_12 = arith.constant 0.000000e+00 : f32
    %22 = vector.broadcast %cst_12 : f32 to vector<8x15xf32>
    %23 = vector.extract_strided_slice %9 {offsets = [0, 0], sizes = [8, 241], strides = [1, 1]} : vector<8x256xf32> to vector<8x241xf32>
    %24 = tpu.concatenate %22, %23 in 1 : vector<8x15xf32>, vector<8x241xf32> -> vector<8x256xf32>
    %c2 = arith.constant 2 : index
    %c0_13 = arith.constant 0 : index
    %25 = vector.load %arg8[%c2, %c0_13] : memref<9x256xf32, #tpu.memory_space<vmem>>, vector<1x256xf32>
    %26 = vector.broadcast %25 : vector<1x256xf32> to vector<8x256xf32>
    %27 = arith.mulf %24, %26 : vector<8x256xf32>
    %cst_14 = arith.constant 0.000000e+00 : f32
    %28 = vector.broadcast %cst_14 : f32 to vector<8x1xf32>
    %29 = vector.extract_strided_slice %9 {offsets = [0, 0], sizes = [8, 255], strides = [1, 1]} : vector<8x256xf32> to vector<8x255xf32>
    %30 = tpu.concatenate %28, %29 in 1 : vector<8x1xf32>, vector<8x255xf32> -> vector<8x256xf32>
    %c3 = arith.constant 3 : index
    %c0_15 = arith.constant 0 : index
    %31 = vector.load %arg8[%c3, %c0_15] : memref<9x256xf32, #tpu.memory_space<vmem>>, vector<1x256xf32>
    %32 = vector.broadcast %31 : vector<1x256xf32> to vector<8x256xf32>
    %33 = arith.mulf %30, %32 : vector<8x256xf32>
    %34 = vector.extract_strided_slice %9 {offsets = [0, 1], sizes = [8, 255], strides = [1, 1]} : vector<8x256xf32> to vector<8x255xf32>
    %cst_16 = arith.constant 0.000000e+00 : f32
    %35 = vector.broadcast %cst_16 : f32 to vector<8x1xf32>
    %36 = tpu.concatenate %34, %35 in 1 : vector<8x255xf32>, vector<8x1xf32> -> vector<8x256xf32>
    %c5 = arith.constant 5 : index
    %c0_17 = arith.constant 0 : index
    %37 = vector.load %arg8[%c5, %c0_17] : memref<9x256xf32, #tpu.memory_space<vmem>>, vector<1x256xf32>
    %38 = vector.broadcast %37 : vector<1x256xf32> to vector<8x256xf32>
    %39 = arith.mulf %36, %38 : vector<8x256xf32>
    %40 = vector.extract_strided_slice %9 {offsets = [0, 15], sizes = [8, 241], strides = [1, 1]} : vector<8x256xf32> to vector<8x241xf32>
    %cst_18 = arith.constant 0.000000e+00 : f32
    %41 = vector.broadcast %cst_18 : f32 to vector<8x15xf32>
    %42 = tpu.concatenate %40, %41 in 1 : vector<8x241xf32>, vector<8x15xf32> -> vector<8x256xf32>
    %c6 = arith.constant 6 : index
    %c0_19 = arith.constant 0 : index
    %43 = vector.load %arg8[%c6, %c0_19] : memref<9x256xf32, #tpu.memory_space<vmem>>, vector<1x256xf32>
    %44 = vector.broadcast %43 : vector<1x256xf32> to vector<8x256xf32>
    %45 = arith.mulf %42, %44 : vector<8x256xf32>
    %46 = vector.extract_strided_slice %9 {offsets = [0, 16], sizes = [8, 240], strides = [1, 1]} : vector<8x256xf32> to vector<8x240xf32>
    %cst_20 = arith.constant 0.000000e+00 : f32
    %47 = vector.broadcast %cst_20 : f32 to vector<8x16xf32>
    %48 = tpu.concatenate %46, %47 in 1 : vector<8x240xf32>, vector<8x16xf32> -> vector<8x256xf32>
    %c7 = arith.constant 7 : index
    %c0_21 = arith.constant 0 : index
    %49 = vector.load %arg8[%c7, %c0_21] : memref<9x256xf32, #tpu.memory_space<vmem>>, vector<1x256xf32>
    %50 = vector.broadcast %49 : vector<1x256xf32> to vector<8x256xf32>
    %51 = arith.mulf %48, %50 : vector<8x256xf32>
    %52 = vector.extract_strided_slice %9 {offsets = [0, 17], sizes = [8, 239], strides = [1, 1]} : vector<8x256xf32> to vector<8x239xf32>
    %cst_22 = arith.constant 0.000000e+00 : f32
    %53 = vector.broadcast %cst_22 : f32 to vector<8x17xf32>
    %54 = tpu.concatenate %52, %53 in 1 : vector<8x239xf32>, vector<8x17xf32> -> vector<8x256xf32>
    %c8 = arith.constant 8 : index
    %c0_23 = arith.constant 0 : index
    %55 = vector.load %arg8[%c8, %c0_23] : memref<9x256xf32, #tpu.memory_space<vmem>>, vector<1x256xf32>
    %56 = vector.broadcast %55 : vector<1x256xf32> to vector<8x256xf32>
    %57 = arith.mulf %54, %56 : vector<8x256xf32>
    %58 = tpu.concatenate %15, %21, %27, %33, %9, %39, %45, %51, %57 in 0 : vector<8x256xf32>, vector<8x256xf32>, vector<8x256xf32>, vector<8x256xf32>, vector<8x256xf32>, vector<8x256xf32>, vector<8x256xf32>, vector<8x256xf32>, vector<8x256xf32> -> vector<72x256xf32>
    %59 = arith.truncf %58 : vector<72x256xf32> to vector<72x256xbf16>
    %c0_24 = arith.constant 0 : index
    %c0_25 = arith.constant 0 : index
    %60 = vector.load %arg3[%c0_24, %c0_25] : memref<8x72xbf16, #tpu.memory_space<vmem>>, vector<8x72xbf16>
    %cst_26 = arith.constant dense<0.000000e+00> : vector<8x256xf32>
    %61 = tpu.matmul %60, %59, %cst_26 {dimension_numbers = #tpu.dot_dimension_numbers<[1], [0], [0], [1], [0, 0, 1, 1], [], []>} : vector<8x72xbf16>, vector<72x256xbf16>, vector<8x256xf32> -> vector<8x256xf32>
    %c0_27 = arith.constant 0 : index
    %c0_28 = arith.constant 0 : index
    %62 = vector.load %arg6[%c0_27, %c0_28] : memref<8x1xf32, #tpu.memory_space<vmem>>, vector<8x1xf32>
    %63 = vector.broadcast %62 : vector<8x1xf32> to vector<8x256xf32>
    %64 = arith.addf %61, %63 : vector<8x256xf32>
    %cst_29 = arith.constant 0.000000e+00 : f32
    %65 = vector.broadcast %cst_29 : f32 to vector<8x256xf32>
    %66 = arith.maximumf %64, %65 : vector<8x256xf32>
    %c0_30 = arith.constant 0 : index
    %c0_31 = arith.constant 0 : index
    %67 = vector.load %arg4[%c0_30, %c0_31] : memref<32x8xbf16, #tpu.memory_space<vmem>>, vector<32x8xbf16>
    %68 = arith.truncf %66 : vector<8x256xf32> to vector<8x256xbf16>
    %cst_32 = arith.constant dense<0.000000e+00> : vector<32x256xf32>
    %69 = tpu.matmul %67, %68, %cst_32 {dimension_numbers = #tpu.dot_dimension_numbers<[1], [0], [0], [1], [0, 0, 1, 1], [], []>} : vector<32x8xbf16>, vector<8x256xbf16>, vector<32x256xf32> -> vector<32x256xf32>
    %c0_33 = arith.constant 0 : index
    %c0_34 = arith.constant 0 : index
    %70 = vector.load %arg7[%c0_33, %c0_34] : memref<32x1xf32, #tpu.memory_space<vmem>>, vector<32x1xf32>
    %71 = vector.broadcast %70 : vector<32x1xf32> to vector<32x256xf32>
    %72 = arith.addf %69, %71 : vector<32x256xf32>
    %c0_35 = arith.constant 0 : index
    %c0_36 = arith.constant 0 : index
    %c0_37 = arith.constant 0 : index
    %73 = vector.load %arg1[%c0_35, %c0_36, %c0_37] : memref<1x32x256xf32, #tpu.memory_space<vmem>>, vector<1x32x256xf32>
    %74 = vector.shape_cast %73 : vector<1x32x256xf32> to vector<32x256xf32>
    %75 = arith.addf %72, %74 : vector<32x256xf32>
    %cst_38 = arith.constant 0.000000e+00 : f32
    %76 = vector.broadcast %cst_38 : f32 to vector<32x256xf32>
    %77 = arith.maximumf %75, %76 : vector<32x256xf32>
    %c0_39 = arith.constant 0 : index
    %c0_40 = arith.constant 0 : index
    %c0_41 = arith.constant 0 : index
    %78 = vector.load %arg9[%c0_39, %c0_40, %c0_41] : memref<1x32x256xf32, #tpu.memory_space<vmem>>, vector<1x32x256xf32>
    %79 = vector.shape_cast %78 : vector<1x32x256xf32> to vector<32x256xf32>
    %80 = vector.shape_cast %77 : vector<32x256xf32> to vector<1x32x256xf32>
    tpu.vector_store %arg9[%c0_39, %c0_40, %c0_41], %80 {strides = array<i32>} : memref<1x32x256xf32, #tpu.memory_space<vmem>>, vector<1x32x256xf32>,
    return
  }
  func.func @transform_0(%arg0: i32) -> (i32, i32, i32) {
    %c0_i32 = arith.constant 0 : i32
    %c0_i32_0 = arith.constant 0 : i32
    %c0_i32_1 = arith.constant 0 : i32
    return %arg0, %c0_i32, %c0_i32_0 : i32, i32, i32
  }
  func.func @transform_1(%arg0: i32) -> (i32, i32) {
    %c0_i32 = arith.constant 0 : i32
    %c0_i32_0 = arith.constant 0 : i32
    %c0_i32_1 = arith.constant 0 : i32
    return %c0_i32, %c0_i32_0 : i32, i32
  }
  func.func @transform_2(%arg0: i32) -> (i32, i32) {
    %c0_i32 = arith.constant 0 : i32
    %c0_i32_0 = arith.constant 0 : i32
    %c0_i32_1 = arith.constant 0 : i32
    return %c0_i32, %c0_i32_0 : i32, i32
  }
  func.func @transform_3(%arg0: i32) -> (i32, i32) {
    %c0_i32 = arith.constant 0 : i32
    %c0_i32_0 = arith.constant 0 : i32
    %c0_i32_1 = arith.constant 0 : i32
    return %c0_i32, %c0_i32_0 : i32, i32
  }
  func.func @transform_4(%arg0: i32) -> (i32, i32) {
    %c0_i32 = arith.constant 0 : i32
    %c0_i32_0 = arith.constant 0 : i32
    %c0_i32_1 = arith.constant 0 : i32
    return %c0_i32, %c0_i32_0 : i32, i32
  }
  func.func @transform_5(%arg0: i32) -> (i32, i32) {
    %c0_i32 = arith.constant 0 : i32
    %c0_i32_0 = arith.constant 0 : i32
    %c0_i32_1 = arith.constant 0 : i32
    return %c0_i32, %c0_i32_0 : i32, i32
  }
  func.func @transform_6(%arg0: i32) -> (i32, i32) {
    %c0_i32 = arith.constant 0 : i32
    %c0_i32_0 = arith.constant 0 : i32
    %c0_i32_1 = arith.constant 0 : i32
    return %c0_i32, %c0_i32_0 : i32, i32
  }
  func.func @transform_7(%arg0: i32) -> (i32, i32) {
    %c0_i32 = arith.constant 0 : i32
    %c0_i32_0 = arith.constant 0 : i32
    %c0_i32_1 = arith.constant 0 : i32
    return %c0_i32, %c0_i32_0 : i32, i32
  }
  func.func @transform_8(%arg0: i32) -> (i32, i32, i32) {
    %c0_i32 = arith.constant 0 : i32
    %c0_i32_0 = arith.constant 0 : i32
    %c0_i32_1 = arith.constant 0 : i32
    return %arg0, %c0_i32, %c0_i32_0 : i32, i32, i32
  }
}

</mosaic_0001>

<bundles_post_ra>
// kernel: tpu_custom_call.1
= control target key start
LH: loop header
LB: loop body
LE: loop exit
PB: predicated region body
PF: predicated region fallthrough
CT: control target
= control target key end

     0   :  { %13 = vsyncpa [#allocation3], 0  ;;  %s1308_s0 = inlined_call_operand.hbm [shape: f32[2,32,256], index: 0, kind: input, shape index: {}]   ;;  %s1309_s1 = inlined_call_operand.vmem [shape: bf16[8,32], index: 1, kind: input, shape index: {}]   ;;  %s1310_s2 = inlined_call_operand.vmem [shape: bf16[8,72], index: 2, kind: input, shape index: {}]   ;;  %s1311_s3 = inlined_call_operand.vmem [shape: bf16[32,8], index: 3, kind: input, shape index: {}]   ;;  %s1312_s4 = inlined_call_operand.vmem [shape: f32[8,1], index: 4, kind: input, shape index: {}]   ;;  %s1313_s5 = inlined_call_operand.vmem [shape: f32[8,1], index: 5, kind: input, shape index: {}]   ;;  %s1314_s6 = inlined_call_operand.vmem [shape: f32[32,1], index: 6, kind: input, shape index: {}]   ;;  %s1315_s7 = inlined_call_operand.vmem [shape: f32[9,256], index: 7, kind: input, shape index: {}]   ;;  %s1316_s8 = inlined_call_operand.hbm [shape: f32[2,32,256], index: 8, kind: output, shape index: {}]  }
   0x1   :  { %15 = vsyncpa [#allocation3 + $0x1], 0 }
   0x2   :  { %16 = vsyncpa [#allocation4], 0 }
   0x3   :  { %18 = vsyncpa [#allocation4 + $0x1], 0  ;;  %s1041_s27 = smov 0   ;;  %s1043_s28 = smov 0  }
   0x4   :  { %s1045_s29 = smov 0   ;;  %s1047_s30 = smov 0  }
   0x5 LB: > { %1318 = sst [smem:[#allocation8_spill]] %s978_s29  ;;  %s1062_s9 = sadd.s32 4294967295, %s982_s30   ;;  %s982_s30 = sphi %s1047_s30, %s1330_s30   ;;  %s978_s29 = sphi %s1045_s29, %s1327_s29   ;;  %s974_s28 = sphi %s1043_s28, %s1329_s28   ;;  %s970_s27 = sphi %s1041_s27, %s1328_s27  }
   0x6   : > { %s783_s10 = sadd.s32 4294967294, %s982_s30   ;;  %s1066_s11 = sadd.s32 1, %s982_s30  }
   0x7   : > { %s31_s12 = sadd.s32 1, %s978_s29  ;;  %s28_s13 = ssub.s32 %s982_s30, %s1066_s11 }
   0x8   : > { %p38_p0 = scmp.ne.s32.totalorder %s978_s29, %s974_s28  ;;  %p29_p1 = scmp.eq.s32.totalorder %s28_s13, 0 }
   0x9   : > { %p39_p2 = scmp.eq.s32.totalorder %s982_s30, 0  ;;  %p44_p3 = scmp.ne.s32.totalorder %s974_s28, %s970_s27 }
   0xa   : > { %p45_p4 = scmp.eq.s32.totalorder %s1062_s9, 0  ;;  %p215_p7 = scmp.eq.s32.totalorder %s1062_s9, 1 }
   0xb   : > { %s1078_s14 = scalar_select %p29_p1, %s978_s29, %s31_s12  }
   0xc   : > { %p1080_p5 = por %p39_p2, %p38_p0  ;;  %p1084_p6 = por %p45_p4, %p44_p3 }
   0xd   : > { %1319 = sst [smem:[#allocation9_spill]] %s1078_s14  ;;  %p221_p8 = scmp.eq.s32.totalorder %s783_s10, 1 }
   0xe   : > { %p837_p10 = scmp.lt.s32.totalorder %s982_s30, 2  ;;  %p1091_p11 = por %p215_p7, %p38_p0 }
   0xf   : > { %p1095_p12 = por %p221_p8, %p44_p3  ;;  %s262_s19 = sand.u32 1, %s978_s29  }
  0x10   : > { %s820_s20 = sshll.u32 %s982_s30, 6  ;;  %s786_s21 = sshll.u32 %s262_s19, 6 }
  0x11   : > { %s271_s24 = scalar_lea.hbm %s1308_s0, %s820_s20  ;;  %s266_s26 = scalar_lea.vmem [#allocation2], %s786_s21 }
  0x12   : > { %s272_s25 = sshll.u32 %s271_s24, 4  ;;  %s274_s10 = sshll.u32 %s266_s26, 4  ;;  %s273_s25 = int_to_ptr.hbm [resolvable:$true] %s272_s25  ;;  %s275_s10 = int_to_ptr.vmem [resolvable:$true] %s274_s10 }
  0x13   : > { %p1106_p13 = pnand %p837_p10, %p1080_p5  ;;  %p789_p0 = scmp.ge.s32.totalorder %s982_s30, 1 }
  0x14   : > { %p282_p1 = scmp.lt.s32.totalorder %s982_s30, 3  ;;  %s263_s13 = scalar_lea.sflag [#allocation3], %s262_s19 }
  0x15   : > { %s886_s14 = sshra.s32 %s273_s25, 4  ;;  %p890_p3 = pneg %p1106_p13  ;;  %s887_s14 = int_to_ptr.hbm [resolvable:$true] %s886_s14 }
  0x16   : > { %s888_s29 = scalar_lea.hbm %s887_s14, 64  ;;  %s893_s15 = scalar_lea.hbm %s1308_s0, 128 }
  0x17   : > { %p889_p2 = scmp.ne.s32.totalorder %s887_s14, %s888_s29  ;;  %p894_p5 = scmp.lt.s32.totalorder %s887_s14, %s1308_s0 }
  0x18   : > { %p895_p8 = scmp.lt.s32.totalorder %s893_s15, %s888_s29 }
  0x19   : > { %p891_p4 = pnand %p890_p3, %p889_p2 }
  0x1a   : > { %p896_p10 = por %p895_p8, %p894_p5 }
  0x1b   : > { %p892_p7 = pneg %p891_p4 }
  0x1d   : > { %p897_p9 = pnand %p896_p10, %p892_p7 }
  0x1f   : > { %900 = shalt.err (!%p897_p9)
}
  0x20   : > { %s984_s19 = smov 256   ;;  %s985_s24 = smov 16  }
  0x21   : > { %832 = dma.hbm_to_vmem [thread:$0]  (!%p1106_p13), %s273_s25, 1024, %s275_s10, %s263_s13, %s984_s19, %s984_s19, %s985_s24  }
  0x22   : > { %p283_p2 = pnand %p789_p0, %p282_p1 }
  0x23   : > { %s1127_s26 = sand.u32 (!%p283_p2), 1, %s974_s28  }
  0x24   : > { %286 = sbr.rel (%p283_p2) target bundleno = 653 (0x28d), region = 52  ;;  %s790_s29 = sshll.u32 (!%p283_p2), %s1127_s26, 6 }
  0x25   : > { %s289_s14 = scalar_lea.sflag (!%p283_p2), [#allocation3], %s1127_s26  ;;  %s292_s20 = scalar_lea.vmem (!%p283_p2), [#allocation2], %s790_s29 }
  0x29   : > { %961 = dma.done.wait (%p1084_p6), %s289_s14, 1024  }
  0x2a   : > { %963 = vsyncadd (%p1084_p6), %s289_s14, 4294966272  ;;  %v986_v0 = vmov 0   ;;  %v1137_v1 = vld [vmem:[%s292_s20 + $0x20] sm:$0xff]  ;;  %v1139_v2 = vld [vmem:[%s292_s20 + $0x30] sm:$0xff]  ;;  %vm346_vm0 = vcmask 261120   ;;  %s987_s13 = smov 113  }
  0x2b   : > { %883 = vset.pattern.permute.xlu0 %v986_v0  ;;  %884 = vset.pattern.permute.xlu2 %v986_v0  ;;  %v1141_v3 = vld [vmem:[%s292_s20 + $0x28] sm:$0xff]  ;;  %v338_v4 = vpack.c.bf16 %v1139_v2, %v1137_v1  ;;  %v1145_v5 = vld [vmem:[%s292_s20 + $0x38] sm:$0xff]  ;;  %v1147_v6 = vld [vmem:[%s292_s20] sm:$0xff]  ;;  %s988_s21 = smov 111   ;;  %s989_s15 = smov 112   ;;  %vm509_vm1 = vcmask 908288  }
  0x2c   : > { %885 = vset.pattern.permute.xlu1 %v986_v0  ;;  %v1149_v7 = vld [vmem:[%s292_s20 + $0x10] sm:$0xff]  ;;  %v339_v8 = vpack.c.bf16 %v1145_v5, %v1141_v3  ;;  %v1153_v9 = vld [vmem:[%s292_s20 + $0x8] sm:$0xff]  ;;  %v1155_v10 = vld [vmem:[%s292_s20 + $0x18] sm:$0xff]  ;;  %s990_s22 = smov 127   ;;  %s991_s23 = smov 15   ;;  %vm544_vm2 = vcmask 1043456  }
  0x2d   : > { %356 = vmatpush.bf16.msra.mxu2 %v338_v4  ;;  %v336_v11 = vpack.c.bf16 %v1149_v7, %v1147_v6  ;;  %v340_v12 = vld [vmem:[%s1312_s4] sm:$0xff]  ;;  %v337_v13 = vpack.c.bf16 %v1155_v10, %v1153_v9  ;;  %s992_s19 = smov 17   ;;  %s993_s24 = smov 1   ;;  %v588_v25 = vld [vmem:[%s1314_s6 + $0x18] sm:$0xff]  ;;  %vm473_vm3 = vcmask 924672   ;;  %vm455_vm4 = vcmask 1039360  }
  0x2e   : > { %369 = vmatpush.bf16.msra.mxu1 %v339_v8  ;;  %343 = vperm.xlu0 %883, %v340_v12   ;;  %v327_v14 = vld [vmem:[%s1309_s1] sm:$0xf]  ;;  %s994_s14 = smov 16   ;;  %v800_v27 = vld [vmem:[%s1315_s7 + $0x10] ss:$8 sm:$0x3] }
  0x2f   : > { %v585_v24 = vld [vmem:[%s1314_s6] sm:$0xff]  ;;  %v518_v28 = vperm.slane %v800_v27, 1  ;;  %v517_v33 = vperm.slane %v800_v27, 0  ;;  %vm491_vm5 = vcmask 916480   ;;  %vm419_vm6 = vcmask 121856   ;;  %s695_s25 = scalar_lea.sflag [#allocation4], %s1127_s26 }
  0x30   : > { %v798_v38 = vld [vmem:[%s1315_s7 + $0x6] ss:$8 sm:$0x3]  ;;  %v799_v41 = vld [vmem:[%s1315_s7 + $0x7] ss:$8 sm:$0x3] }
  0x31   : > { %357 = vmatpush.bf16.msra.mxu2 %v336_v11  ;;  %v482_v43 = vperm.slane %v798_v38, 1  ;;  %v797_v44 = vld [vmem:[%s1315_s7 + $0x5] ss:$8 sm:$0x3]  ;;  %v481_v46 = vperm.slane %v798_v38, 0  ;;  %v499_v48 = vperm.slane %v799_v41, 0 }
  0x32   : > { %370 = vmatpush.bf16.msra.mxu1 %v337_v13  ;;  %v500_v49 = vperm.slane %v799_v41, 1  ;;  %v464_v52 = vperm.slane %v797_v44, 1  ;;  %v463_v57 = vperm.slane %v797_v44, 0  ;;  %v795_v12 = vld [vmem:[%s1315_s7 + $0x2] ss:$8 sm:$0x3] }
  0x33   : > { %v796_v13 = vld [vmem:[%s1315_s7 + $0x3] ss:$8 sm:$0x3]  ;;  %vm437_vm7 = vcmask 7168   ;;  %vm384_vm8 = vcmask 138240   ;;  %vm401_vm9 = vcmask 130048  }
  0x34   : > { %792 = vmatmul.msk.bf16.vlgmr.msra.gmra.mxu2 %vm346_vm0, %v327_v14  ;;  %vm540_vm10 = vcmask 588800   ;;  %vm619_vm11 = vcmask 64512  }
  0x35   : > { %793 = vmatmul.msk.bf16.vlgmr.msra.gmra.mxu1 %vm346_vm0, %v327_v14 }
  0xa0   : > { %v344_v15 = vpop.permute.xlu0 %343 }
  0xb2   : > { %v372_v16 = vpop.f32.mrf.mxu1 }
  0xb3   : > { %v373_v17 = vadd.f32 %v372_v16, %v344_v15 }
  0xb5   : > { %v1167_v18 = vmax.f32 %v373_v17, 0.0 }
  0xb7   : > { %471 = vrot.lane.b32.xlu2 %v1167_v18, %s987_s13  ;;  %507 = vrot.lane.b32.xlu1 %v1167_v18, %s988_s21  ;;  %v359_v19 = vpop.f32.mrf.mxu2 }
  0xb8   : > { %v360_v20 = vadd.f32 %v359_v19, %v344_v15  ;;  %v534_v19 = vld [vmem:[%s1313_s5] sm:$0xff] }
  0xba   : > { %v1171_v21 = vmax.f32 %v360_v20, 0.0  ;;  %v374_v22 = vpop.f32.mrf.mxu1  ;;  %v427_v20 = vperm.slane %v795_v12, 0 }
  0xbb   : > { %v445_v22 = vperm.slane %v796_v13, 0 }
  0xbc   : > { %505 = vrot.lane.b32.xlu0 %v1171_v21, %s988_s21  ;;  %s936_s21 = scalar_lea.hbm %s1316_s8, 128 }
  0xbf   : > { %487 = vrot.lane.b32.xlu2 %v1171_v21, %s989_s15  ;;  %469 = vrot.lane.b32.xlu1 %v1171_v21, %s987_s13  ;;  %v361_v23 = vpop.f32.mrf.mxu2 }
  0xc4   : > { %489 = vrot.lane.b32.xlu0 %v1167_v18, %s989_s15 }
  0xc7   : > { %453 = vrot.lane.b32.xlu2 %v1167_v18, %s990_s22  ;;  %451 = vrot.lane.b32.xlu1 %v1171_v21, %s990_s22  ;;  %s1256_s22 = scalar_lea.vmem [#allocation5], %s790_s29  ;;  %s823_s29 = sshll.u32 %s1062_s9, 6 }
  0xc8   : > { %s707_s20 = sshll.u32 %s1256_s22, 4  ;;  %s708_s20 = int_to_ptr.vmem [resolvable:$true] %s707_s20 }
  0xcc   : > { %415 = vrot.lane.b32.xlu0 %v1171_v21, %s991_s23 }
  0xcf   : > { %380 = vrot.lane.b32.xlu2 %v1171_v21, %s992_s19  ;;  %433 = vrot.lane.b32.xlu1 %v1171_v21, %s993_s24 }
  0xd4   : > { %397 = vrot.lane.b32.xlu0 %v1171_v21, %s994_s14 }
  0xd7   : > { %435 = vrot.lane.b32.xlu2 %v1167_v18, %s993_s24  ;;  %417 = vrot.lane.b32.xlu1 %v1167_v18, %s991_s23  ;;  %s706_s24 = scalar_lea.hbm %s1316_s8, %s823_s29 }
  0xd8   : > { %s709_s16 = sshll.u32 %s706_s24, 4  ;;  %s710_s16 = int_to_ptr.hbm [resolvable:$true] %s709_s16 }
  0xd9   : > { %s930_s10 = sshra.s32 %s710_s16, 4  ;;  %s931_s10 = int_to_ptr.hbm [resolvable:$true] %s930_s10 }
  0xda   : > { %s932_s9 = scalar_lea.hbm %s931_s10, 64  ;;  %p937_p0 = scmp.lt.s32.totalorder %s931_s10, %s1316_s8 }
  0xdb   : > { %p933_p6 = scmp.ne.s32.totalorder %s931_s10, %s932_s9  ;;  %p938_p1 = scmp.lt.s32.totalorder %s936_s21, %s932_s9 }
  0xdc   : > { %382 = vrot.lane.b32.xlu0 %v1167_v18, %s992_s19 }
  0xdd   : > { %p934_p9 = pnand %p933_p6, %p1091_p11  ;;  %p939_p3 = por %p938_p1, %p937_p0 }
  0xdf   : > { %399 = vrot.lane.b32.xlu1 %v1167_v18, %s994_s14  ;;  %537 = vperm.xlu2 %884, %v534_v19   ;;  %p935_p13 = pneg %p934_p9 }
  0xe1   : > { %p940_p4 = pnand %p939_p3, %p935_p13 }
  0xe4   : > { %591 = vperm.xlu0 %883, %v585_v24   ;;  %v389_v24 = vld [vmem:[%s1315_s7] ss:$8 sm:$0x3] }
  0xec   : > { %606 = vperm.xlu0 %883, %v588_v25  }
 0x111   : > { %v472_v26 = vpop.permute.xlu2 %471 }
 0x112   : > { %v477_v50 = vsel %vm473_vm3, %v472_v26, 0.0 }
 0x113   : > { %v486_v58 = vmul.f32 %v482_v43, %v477_v50 }
 0x119   : > { %v488_v29 = vpop.permute.xlu2 %487 }
 0x121   : > { %v454_v45 = vpop.permute.xlu2 %453 }
 0x122   : > { %v459_v54 = vsel %vm455_vm4, %v454_v45, 0.0 }
 0x123   : > { %v468_v63 = vmul.f32 %v464_v52, %v459_v54 }
 0x125   : > { %v528_v17 = vpack.c.bf16 %v468_v63, %v1167_v18  ;;  %v794_v18 = vld [vmem:[%s1315_s7 + $0x1] ss:$8 sm:$0x3] }
 0x126   : > { %v410_v50 = vperm.slane %v794_v18, 1 }
 0x129   : > { %v508_v30 = vpop.permute.xlu1 %507  ;;  %v381_v14 = vpop.permute.xlu2 %380 }
 0x12a   : > { %v513_v31 = vsel %vm509_vm1, %v508_v30, 0.0 }
 0x12b   : > { %v522_v32 = vmul.f32 %v518_v28, %v513_v31  ;;  %v391_v28 = vperm.slane %v389_v24, 0  ;;  %v388_v31 = vsel %vm384_vm8, 0.0, %v381_v14 }
 0x12d   : > { %v532_v34 = vpack.c.bf16 %v522_v32, %v522_v32  ;;  %v395_v38 = vmul.f32 %v391_v28, %v388_v31 }
 0x12e   : > { %v506_v35 = vpop.permute.xlu0 %505 }
 0x12f   : > { %v510_v36 = vsel %vm509_vm1, %v506_v35, %v508_v30  ;;  %v549_v37 = vsel %vm544_vm2, %v532_v34, 0  ;;  %v587_v30 = vld [vmem:[%s1314_s6 + $0x10] sm:$0xff]  ;;  %v446_v35 = vperm.slane %v796_v13, 1 }
 0x130   : > { %v521_v39 = vmul.f32 %v517_v33, %v510_v36  ;;  %567 = vmatpush.bf16.msra.mxu3 %v549_v37  ;;  %v428_v37 = vperm.slane %v795_v12, 1  ;;  %601 = vperm.xlu2 %884, %v587_v30  }
 0x131   : > { %v470_v40 = vpop.permute.xlu1 %469  ;;  %v436_v34 = vpop.permute.xlu2 %435 }
 0x132   : > { %v531_v42 = vpack.c.bf16 %v521_v39, %v521_v39  ;;  %v474_v51 = vsel %vm473_vm3, %v470_v40, %v472_v26 }
 0x133   : > { %v485_v59 = vmul.f32 %v481_v46, %v474_v51  ;;  %v533_v46 = vld [vmem:[%s1310_s2] sm:$0xf] }
 0x134   : > { %v546_v47 = vsel %vm544_vm2, %v531_v42, 0 }
 0x135   : > { %554 = vmatpush.bf16.msrb.mxu2 %v546_v47 }
 0x136   : > { %v490_v53 = vpop.permute.xlu0 %489 }
 0x137   : > { %v492_v55 = vsel %vm491_vm5, %v488_v29, %v490_v53  ;;  %v495_v56 = vsel %vm491_vm5, %v490_v53, 0.0  ;;  %v409_v29 = vperm.slane %v794_v18, 0 }
 0x138   : > { %v503_v60 = vmul.f32 %v499_v48, %v492_v55  ;;  %v504_v61 = vmul.f32 %v500_v49, %v495_v56  ;;  %v392_v49 = vperm.slane %v389_v24, 1 }
 0x139   : > { %v452_v62 = vpop.permute.xlu1 %451 }
 0x13a   : > { %v456_v0 = vsel %vm455_vm4, %v452_v62, %v454_v45  ;;  %v529_v4 = vpack.c.bf16 %v503_v60, %v485_v59  ;;  %v530_v8 = vpack.c.bf16 %v504_v61, %v486_v58  ;;  %v538_v58 = vpop.permute.xlu2 %537 }
 0x13b   : > { %v467_v11 = vmul.f32 %v463_v57, %v456_v0  ;;  %v586_v57 = vld [vmem:[%s1314_s6 + $0x8] sm:$0xff]  ;;  %v821_v0 = vld [vmem:[%s1311_s3] sm:$0xff] }
 0x13c   : > { %555 = vmatpush.bf16.msrb.mxu2 %v529_v4  ;;  %568 = vmatpush.bf16.msra.mxu3 %v530_v8 }
 0x13d   : > { %v527_v16 = vpack.c.bf16 %v467_v11, %v1171_v21  ;;  %596 = vperm.xlu1 %885, %v586_v57  }
 0x13e   : > { %v416_v15 = vpop.permute.xlu0 %415 }
 0x13f   : > { %v423_v23 = vsel %vm419_vm6, 0.0, %v416_v15 }
 0x140   : > { %556 = vmatpush.bf16.msrb.mxu2 %v527_v16  ;;  %569 = vmatpush.bf16.msra.mxu3 %v528_v17  ;;  %v431_v26 = vmul.f32 %v427_v20, %v423_v23 }
 0x141   : > { %v434_v25 = vpop.permute.xlu1 %433 }
 0x142   : > { %v441_v21 = vsel %vm437_vm7, 0.0, %v434_v25  ;;  %v438_v39 = vsel %vm437_vm7, %v434_v25, %v436_v34 }
 0x143   : > { %v449_v27 = vmul.f32 %v445_v22, %v441_v21  ;;  %v450_v44 = vmul.f32 %v446_v35, %v438_v39 }
 0x145   : > { %v525_v32 = vpack.c.bf16 %v449_v27, %v431_v26 }
 0x146   : > { %v398_v33 = vpop.permute.xlu0 %397 }
 0x147   : > { %557 = vmatpush.bf16.msrb.mxu2 %v525_v32  ;;  %v405_v36 = vsel %vm401_vm9, 0.0, %v398_v33 }
 0x148   : > { %v413_v40 = vmul.f32 %v409_v29, %v405_v36 }
 0x149   : > { %v418_v41 = vpop.permute.xlu1 %417 }
 0x14a   : > { %v420_v42 = vsel %vm419_vm6, %v416_v15, %v418_v41  ;;  %v523_v43 = vpack.c.bf16 %v413_v40, %v395_v38  ;;  %v822_v15 = vld [vmem:[%s1311_s3 + $0x8] sm:$0xff] }
 0x14b   : > { %v432_v45 = vmul.f32 %v428_v37, %v420_v42 }
 0x14c   : > { %558 = vmatpush.bf16.msrb.mxu2 %v523_v43 }
 0x14d   : > { %v526_v47 = vpack.c.bf16 %v450_v44, %v432_v45 }
 0x14e   : > { %v383_v48 = vpop.permute.xlu0 %382 }
 0x14f   : > { %570 = vmatpush.bf16.msra.mxu3 %v526_v47  ;;  %801 = vmatmul.msk.bf16.vlgmr.msrb.gmra.mxu2 %vm540_vm10, %v533_v46  ;;  %v385_v51 = vsel %vm384_vm8, %v381_v14, %v383_v48 }
 0x150   : > { %v396_v54 = vmul.f32 %v392_v49, %v385_v51 }
 0x151   : > { %v400_v52 = vpop.permute.xlu1 %399 }
 0x152   : > { %v402_v53 = vsel %vm401_vm9, %v398_v33, %v400_v52 }
 0x153   : > { %v414_v55 = vmul.f32 %v410_v50, %v402_v53 }
 0x155   : > { %v524_v56 = vpack.c.bf16 %v414_v55, %v396_v54 }
 0x156   : > { %v592_v17 = vpop.permute.xlu0 %591 }
 0x157   : > { %571 = vmatpush.bf16.msra.mxu3 %v524_v56 }
 0x15a   : > { %802 = vmatmul.msk.bf16.vlgmr.msra.gmra.mxu3 %vm540_vm10, %v533_v46 }
 0x15e   : > { %v607_v33 = vpop.permute.xlu0 %606 }
 0x18a   : > { %v602_v21 = vpop.permute.xlu2 %601 }
 0x1af   : > { %v597_v24 = vpop.permute.xlu1 %596 }
 0x1d2   : > { %v560_v59 = vpop.f32.mrf.mxu2 }
 0x1d3   : > { %v561_v60 = vadd.f32 %v560_v59, %v538_v58 }
 0x1d5   : > { %v577_v61 = vmax.f32 %v561_v60, 0.0 }
 0x1d7   : > { %v583_v62 = vpack.c.bf16 %v577_v61, %v577_v61 }
 0x1d9   : > { %v627_v63 = vsel %vm544_vm2, %v583_v62, 0 }
 0x1da   : > { %v562_v4 = vpop.f32.mrf.mxu2  ;;  %639 = vmatpush.bf16.msra.mxu0 %v627_v63 }
 0x1dd   : > { %v573_v8 = vpop.f32.mrf.mxu3  ;;  %811 = vmatmul.msk.bf16.vlgmr.msra.gmra.mxu0 %vm619_vm11, %v821_v0 }
 0x1de   : > { %v574_v11 = vadd.f32 %v573_v8, %v538_v58 }
 0x1e0   : > { %v578_v12 = vmax.f32 %v574_v11, 0.0 }
 0x1e2   : > { %v584_v13 = vpack.c.bf16 %v578_v12, %v578_v12 }
 0x1e4   : > { %v630_v14 = vsel %vm544_vm2, %v584_v13, 0 }
 0x1e5   : > { %v575_v16 = vpop.f32.mrf.mxu3  ;;  %658 = vmatpush.bf16.msrb.mxu0 %v630_v14  ;;  %824 = vmatpush.bf16.msrb.mxu1 %v630_v14 }
 0x1e8   : > { %814 = vmatmul.msk.bf16.vlgmr.msrb.gmra.mxu1 %vm619_vm11, %v822_v15 }
 0x1ed   : > { %812 = vmatmul.msk.bf16.gmra.mxu0 %vm619_vm11, %v822_v15 }
 0x1fd   : > { %813 = vmatmul.msk.bf16.vlgmr.msrb.gmra.mxu0 %vm619_vm11, %v821_v0 }
 0x25a   : > { %v641_v19 = vpop.f32.mrf.mxu0 }
 0x25b   : > { %v642_v20 = vadd.f32 %v641_v19, %v592_v17 }
 0x25d   : > { %v670_v22 = vadd.f32 %v642_v20, %v1147_v6 }
 0x25f   : > { %v678_v23 = vmax.f32 %v670_v22, 0.0 }
 0x261   : > { %686 = vst [vmem:[%s1256_s22] sm:$0xff] %v678_v23 }
 0x262   : > { %v643_v25 = vpop.f32.mrf.mxu0 }
 0x263   : > { %v644_v18 = vadd.f32 %v643_v25, %v597_v24 }
 0x265   : > { %v672_v26 = vadd.f32 %v644_v18, %v1149_v7  ;;  %v665_v27 = vpop.f32.mrf.mxu1 }
 0x266   : > { %v666_v28 = vadd.f32 %v665_v27, %v602_v21 }
 0x267   : > { %v680_v29 = vmax.f32 %v672_v26, 0.0 }
 0x268   : > { %v675_v6 = vadd.f32 %v666_v28, %v1141_v3 }
 0x269   : > { %688 = vst [vmem:[%s1256_s22 + $0x10] sm:$0xff] %v680_v29 }
 0x26a   : > { %v683_v30 = vmax.f32 %v675_v6, 0.0  ;;  %v646_v31 = vpop.f32.mrf.mxu0 }
 0x26b   : > { %v647_v32 = vadd.f32 %v646_v31, %v602_v21 }
 0x26c   : > { %691 = vst [vmem:[%s1256_s22 + $0x28] sm:$0xff] %v683_v30 }
 0x26d   : > { %v674_v34 = vadd.f32 %v647_v32, %v1137_v1  ;;  %v667_v35 = vpop.f32.mrf.mxu1 }
 0x26e   : > { %v668_v36 = vadd.f32 %v667_v35, %v607_v33 }
 0x26f   : > { %v682_v7 = vmax.f32 %v674_v34, 0.0 }
 0x270   : > { %v677_v37 = vadd.f32 %v668_v36, %v1145_v5 }
 0x271   : > { %690 = vst [vmem:[%s1256_s22 + $0x20] sm:$0xff] %v682_v7 }
 0x272   : > { %v685_v3 = vmax.f32 %v677_v37, 0.0  ;;  %v648_v38 = vpop.f32.mrf.mxu0 }
 0x273   : > { %v649_v39 = vadd.f32 %v648_v38, %v607_v33 }
 0x274   : > { %693 = vst [vmem:[%s1256_s22 + $0x38] sm:$0xff] %v685_v3 }
 0x275   : > { %v676_v40 = vadd.f32 %v649_v39, %v1139_v2 }
 0x277   : > { %v684_v41 = vmax.f32 %v676_v40, 0.0 }
 0x279   : > { %692 = vst [vmem:[%s1256_s22 + $0x30] sm:$0xff] %v684_v41 }
 0x27a   : > { %v660_v42 = vpop.f32.mrf.mxu0 }
 0x27b   : > { %v661_v1 = vadd.f32 %v660_v42, %v592_v17 }
 0x27d   : > { %v671_v43 = vadd.f32 %v661_v1, %v1153_v9 }
 0x27f   : > { %v679_v44 = vmax.f32 %v671_v43, 0.0 }
 0x281   : > { %687 = vst [vmem:[%s1256_s22 + $0x8] sm:$0xff] %v679_v44 }
 0x282   : > { %v662_v5 = vpop.f32.mrf.mxu0 }
 0x283   : > { %v663_v45 = vadd.f32 %v662_v5, %v597_v24 }
 0x285   : > { %v673_v2 = vadd.f32 %v663_v45, %v1155_v10 }
 0x287   : > { %v681_v46 = vmax.f32 %v673_v2, 0.0 }
 0x289   : > { %689 = vst [vmem:[%s1256_s22 + $0x18] sm:$0xff] %v681_v46 }
 0x28a   : > { %943 = shalt.err (!%p940_p4)
}
 0x28b   : > { %s995_s26 = smov 256  }
 0x28c   : > { %827 = dma.vmem_to_hbm [thread:$0]  (%p1091_p11), %s708_s20, 1024, %s710_s16, %s695_s25, %s995_s26, %s995_s26, %s994_s14  }
 0x28d PF: > { %s724_s22 = sand.u32 1, %s970_s27   ;;  %p1325_p7 = scmp.ge.s32.totalorder %s982_s30, 2 }
 0x28e   : > { %s725_s23 = scalar_lea.sflag [#allocation4], %s724_s22 }
 0x28f   : > { %p834_p5 = pnand %p1325_p7, %p1095_p12 }
 0x291   : > { %p835_p8 = pneg %p834_p5 }
 0x293   : > { %965 = dma.done.wait (%p835_p8), %s725_s23, 1024  }
 0x294   : > { %967 = vsyncadd (%p835_p8), %s725_s23, 4294966272  ;;  %s1326_s19 = sld [smem:[#allocation8_spill]]  ;;  %p21_p10 = scmp.ge.s32.totalorder %s1066_s11, 4  }
 0x295   : > { %s1327_s29 = sld [smem:[#allocation9_spill]]  ;;  %s1328_s27 = smov %s974_s28 }
 0x296   : > { %s1330_s30 = smov %s1066_s11  ;;  %23 = sbr.rel (!%p21_p10) target bundleno = 5 (0x5), region = 104 }
 0x29a   : > { %s1329_s28 = smov %s1326_s19 }
 0x29b   :  { %731 = vsyncpa [#allocation3], 1 }
 0x29c   :  { %733 = vsyncpa [#allocation3 + $0x1], 1 }
 0x29d   :  { %734 = vsyncpa [#allocation4], 1 }
 0x29e   :  { %736 = vsyncpa [#allocation4 + $0x1], 1 }

</bundles_post_ra>
